<compile_context>
chip_gen: v5e
topology: v5e:2x2
jax: 0.10.0
libtpu: 0.0.40
codegen_flags: <defaults>
</compile_context>

<pallas_src>
import functools

import jax
import jax.numpy as jnp
from jax.experimental import pallas as pl
from jax.experimental.pallas import tpu as pltpu

_LANES = 128
_SUBLANES = 8


def _round_up(x, m):
    return pl.cdiv(x, m) * m


def _chip_config(itemsize):
    """Per-TPU-generation streaming config.

    Returns (target_block_rows, vmem_limit_bytes_or_None, two_tensorcores,
    bf16_compute_ok).
    """
    gen = None
    try:
        kind = jax.devices()[0].device_kind.lower()
        if "v7" in kind or "tpu7" in kind:
            gen = 7
        elif "v6" in kind or "tpu6" in kind:
            gen = 6
        elif "v5" in kind:
            gen = 5
    except Exception:  # non-TPU backend / interpret mode -> conservative defaults
        gen = None

    if gen == 7:
        # ~3.2 TB/s HBM, 64 MiB physical VMEM, 2 TensorCores.
        # 8 MiB per input per pipeline buffer -> 32 MiB pipeline < 48 MiB limit.
        budget_bytes = 8 << 20
        vmem_limit = 48 << 20
        two_cores = True
        bf16_ok = True
    elif gen == 6:
        # ~1.4 TB/s HBM, 128 MiB physical VMEM, 1 TensorCore.
        # 4 MiB per input per buffer -> 16 MiB pipeline.
        budget_bytes = 4 << 20
        vmem_limit = 64 << 20
        two_cores = False
        bf16_ok = True
    else:
        # v5e (~820 GB/s, 16 MiB default scoped VMEM) and unknown chips:
        # keep the proven 2 MiB blocks and the default VMEM limit.
        budget_bytes = 2 << 20
        vmem_limit = None
        two_cores = False
        bf16_ok = False

    return budget_bytes // (_LANES * itemsize), vmem_limit, two_cores, bf16_ok


def _l1_sum_kernel(x_ref, y_ref, o_ref, acc_ref, *,
                   compute_dtype, needs_mask, tail_valid_rows, rows_div8):
    j = pl.program_id(1)   # sequential streaming index

    @pl.when(j == 0)
    def _init():
        acc_ref[...] = jnp.zeros_like(acc_ref)

    x = x_ref[...].astype(compute_dtype)
    y = y_ref[...].astype(compute_dtype)
    diff = jnp.abs(x - y)

    def _accumulate(d):
        # Upcast to f32 only at the accumulate (bf16 sub/abs stays packed).
        d32 = d.astype(jnp.float32)
        if rows_div8:
            # (block_rows, 128) -> (8, 128) with pure VPU adds.
            acc_ref[...] += d32.reshape(-1, _SUBLANES, _LANES).sum(axis=0)
        else:
            # Tiny single-block case: block_rows == rows and rows % 8 != 0.
            acc_ref[0:1, :] += d32.sum(axis=0, keepdims=True)

    if needs_mask:
        # Only the globally-last block extends past the real row count, so the
        # iota/compare/select runs exactly once; every interior step takes the
        # unmasked fast path.
        is_tail = jnp.logical_and(pl.program_id(0) == pl.num_programs(0) - 1,
                                  j == pl.num_programs(1) - 1)

        @pl.when(jnp.logical_not(is_tail))
        def _fast():
            _accumulate(diff)

        @pl.when(is_tail)
        def _tail():
            row = jax.lax.broadcasted_iota(jnp.int32, diff.shape, 0)
            _accumulate(jnp.where(row < tail_valid_rows, diff, 0.0))
    else:
        _accumulate(diff)

    @pl.when(j == pl.num_programs(1) - 1)
    def _finalize():
        # Single cross-lane/sublane reduction per partial, in the epilogue.
        o_ref[0, 0] = jnp.sum(acc_ref[...])


def l1_loss(cleaned_images, images):
    """mean(|cleaned_images - images|) over all elements (scalar, f32)."""
    assert cleaned_images.shape == images.shape, "L1Loss expects equal shapes"
    n_elems = cleaned_images.size
    if n_elems == 0:
        # torch.nn.L1Loss(reduction='mean') returns NaN for empty input.
        return jnp.float32(jnp.nan)

    x = cleaned_images.reshape(-1)
    y = images.reshape(-1)

    # Reshape to (rows, 128) lanes.  The pad only triggers when the element
    # count is not a multiple of 128 (rare for image tensors); padded zeros
    # contribute |0 - 0| = 0.
    # TODO(synk): when size % 128 != 0 this materializes padded copies of both
    # inputs (~3x HBM traffic); an in-kernel lane-masked tail would avoid it.
    rem = n_elems % _LANES
    if rem:
        x = jnp.pad(x, (0, _LANES - rem))
        y = jnp.pad(y, (0, _LANES - rem))
    rows = pl.cdiv(n_elems, _LANES)
    x2 = x.reshape(rows, _LANES)
    y2 = y.reshape(rows, _LANES)

    itemsize = x2.dtype.itemsize
    target_rows, vmem_limit, two_cores, bf16_ok = _chip_config(itemsize)

    # Block sizing: a single full-array block for small inputs (always a legal
    # block shape), otherwise sublane-aligned streaming blocks sized to the
    # per-generation VMEM budget.
    if rows <= target_rows:
        block_rows = rows
    else:
        block_rows = target_rows            # multiple of 8 (16 for 2-byte dtypes)
    n_blocks = pl.cdiv(rows, block_rows)

    # Two partial sums only on chips with 2 TensorCores (v7x); on single-TC
    # chips an outer split is just a longer sequential loop + extra epilogue.
    outer = 1
    if two_cores and n_blocks >= 2:
        if n_blocks % 2 != 0:
            # Rebalance so both cores get an equal block count and no grid step
            # has to re-read (or fully mask) a redundant block.
            cand = _round_up(pl.cdiv(rows, n_blocks + 1), 16)
            if cand > 0 and pl.cdiv(rows, cand) % 2 == 0:
                block_rows = cand
                n_blocks = pl.cdiv(rows, cand)
        if n_blocks % 2 == 0:
            outer = 2
    inner = n_blocks // outer

    needs_mask = (n_blocks * block_rows) != rows
    tail_valid_rows = rows - (n_blocks - 1) * block_rows
    rows_div8 = (block_rows % _SUBLANES) == 0

    compute_dtype = (x2.dtype if (x2.dtype == jnp.bfloat16 and bf16_ok)
                     else jnp.float32)

    kernel = functools.partial(
        _l1_sum_kernel,
        compute_dtype=compute_dtype,
        needs_mask=needs_mask,
        tail_valid_rows=tail_valid_rows,
        rows_div8=rows_div8,
    )

    def in_map(p, j):
        return (p * inner + j, 0)

    compiler_kwargs = dict(
        # TODO(synk): on v7x, confirm via an xprof trace that the outer axis
        # shards across both TensorCores; if one core idles, switch it to
        # pltpu.CORE_PARALLEL (or an explicit pl.core_map).
        dimension_semantics=("parallel", "arbitrary"),
    )
    if vmem_limit is not None:
        compiler_kwargs["vmem_limit_bytes"] = vmem_limit

    bytes_in = 2 * x2.size * itemsize

    partials = pl.pallas_call(
        kernel,
        out_shape=jax.ShapeDtypeStruct((outer, 1), jnp.float32),
        grid_spec=pltpu.PrefetchScalarGridSpec(
            num_scalar_prefetch=0,
            grid=(outer, inner),
            in_specs=[
                pl.BlockSpec((block_rows, _LANES), in_map),
                pl.BlockSpec((block_rows, _LANES), in_map),
            ],
            out_specs=pl.BlockSpec((1, 1), lambda p, j: (p, 0),
                                   memory_space=pltpu.SMEM),
            scratch_shapes=[pltpu.VMEM((_SUBLANES, _LANES), jnp.float32)],
        ),
        compiler_params=pltpu.CompilerParams(**compiler_kwargs),
        cost_estimate=pl.CostEstimate(
            flops=2 * rows * _LANES,
            transcendentals=0,
            bytes_accessed=bytes_in + 4 * outer,
        ),
    )(x2, y2)

    return (jnp.sum(partials) / jnp.float32(n_elems)).astype(jnp.float32)


if __name__ == "__main__":
    key = jax.random.PRNGKey(0)
    k1, k2, k3, k4, k5, k6 = jax.random.split(key, 6)

    # Primary check: small NCHW image tensors, as the module's forward implies.
    shape = (2, 4, 16, 16)
    cleaned = jax.random.normal(k1, shape, dtype=jnp.float32)
    images = jax.random.normal(k2, shape, dtype=jnp.float32)
    out = jax.block_until_ready(l1_loss(cleaned, images))
    ref = jnp.mean(jnp.abs(cleaned - images))
    assert jnp.allclose(out, ref, rtol=1e-5, atol=1e-6), (out, ref)

    # Multi-block streaming + gated in-kernel tail mask (last block only).
    shape2 = (1, 1, 8200, 128)
    a = jax.random.normal(k3, shape2, dtype=jnp.float32)
    b = jax.random.normal(k4, shape2, dtype=jnp.float32)
    out2 = jax.block_until_ready(l1_loss(a, b))
    ref2 = jnp.mean(jnp.abs(a - b))
    assert jnp.allclose(out2, ref2, rtol=1e-5, atol=1e-6), (out2, ref2)

    # bf16 inputs: streamed at bf16 width; sub/abs in bf16 on v6e/v7x.
    c = jax.random.normal(k5, shape, dtype=jnp.float32).astype(jnp.bfloat16)
    d = jax.random.normal(k6, shape, dtype=jnp.float32).astype(jnp.bfloat16)
    out3 = jax.block_until_ready(l1_loss(c, d))
    ref3 = jnp.mean(jnp.abs(c.astype(jnp.float32) - d.astype(jnp.float32)))
    assert jnp.allclose(out3, ref3, rtol=1e-2, atol=1e-3), (out3, ref3)

    # Element count not a multiple of 128: exercises the (rare) padded path and
    # the tiny full-array block whose row count is not a multiple of 8.
    shape4 = (3, 5, 7, 11)
    e = jax.random.normal(k1, shape4, dtype=jnp.float32)
    f = jax.random.normal(k2, shape4, dtype=jnp.float32)
    out4 = jax.block_until_ready(l1_loss(e, f))
    ref4 = jnp.mean(jnp.abs(e - f))
    assert jnp.allclose(out4, ref4, rtol=1e-5, atol=1e-6), (out4, ref4)

    print("KERNEL_OK")
</pallas_src>

<mosaic_0001>
module attributes {stable_mosaic.version = 11 : i64} {
  func.func @_l1_sum_kernel(%arg0: i32, %arg1: i32, %arg2: memref<16x128xf32, #tpu.memory_space<vmem>>, %arg3: memref<16x128xf32, #tpu.memory_space<vmem>>, %arg4: memref<1x1xf32, #tpu.memory_space<smem>>, %arg5: memref<8x128xf32, #tpu.memory_space<vmem>>) attributes {dimension_semantics = [#tpu.dimension_semantics<parallel>, #tpu.dimension_semantics<arbitrary>], iteration_bounds = array<i64: 1, 1>, scalar_prefetch = 0 : i64, scratch_operands = 1 : i64, tpu.core_type = #tpu.core_type<tc>, window_params = [{transform_indices = @transform_0, window_bounds = array<i64: 16, 128>}, {transform_indices = @transform_1, window_bounds = array<i64: 16, 128>}, {transform_indices = @transform_2, window_bounds = array<i64: 1, 1>}]} {
    %c0_i32 = arith.constant 0 : i32
    %0 = arith.cmpi eq, %arg1, %c0_i32 : i32
    %1 = arith.extui %0 : i1 to i32
    %c0_i32_0 = arith.constant 0 : i32
    %2 = arith.cmpi ne, %1, %c0_i32_0 : i32
    scf.if %2 {
      %cst_10 = arith.constant 0.000000e+00 : f32
      %15 = vector.broadcast %cst_10 : f32 to vector<8x128xf32>
      %c0_11 = arith.constant 0 : index
      %c0_12 = arith.constant 0 : index
      %16 = vector.load %arg5[%c0_11, %c0_12] : memref<8x128xf32, #tpu.memory_space<vmem>>, vector<8x128xf32>
      tpu.vector_store %arg5[%c0_11, %c0_12], %15 {strides = array<i32>} : memref<8x128xf32, #tpu.memory_space<vmem>>, vector<8x128xf32>,
    } else {
    }
    %c0 = arith.constant 0 : index
    %c0_1 = arith.constant 0 : index
    %3 = vector.load %arg2[%c0, %c0_1] : memref<16x128xf32, #tpu.memory_space<vmem>>, vector<16x128xf32>
    %c0_2 = arith.constant 0 : index
    %c0_3 = arith.constant 0 : index
    %4 = vector.load %arg3[%c0_2, %c0_3] : memref<16x128xf32, #tpu.memory_space<vmem>>, vector<16x128xf32>
    %5 = arith.subf %3, %4 : vector<16x128xf32>
    %6 = math.absf %5 : vector<16x128xf32>
    %c0_4 = arith.constant 0 : index
    %c0_5 = arith.constant 0 : index
    %7 = vector.load %arg5[%c0_4, %c0_5] : memref<8x128xf32, #tpu.memory_space<vmem>>, vector<8x128xf32>
    %8 = vector.shape_cast %6 : vector<16x128xf32> to vector<2x8x128xf32>
    %cst = arith.constant dense<0.000000e+00> : vector<8x128xf32>
    %9 = vector.multi_reduction <add>, %8, %cst [0] : vector<2x8x128xf32> to vector<8x128xf32>
    %10 = arith.addf %7, %9 : vector<8x128xf32>
    %c0_6 = arith.constant 0 : index
    %c0_7 = arith.constant 0 : index
    %11 = vector.load %arg5[%c0_6, %c0_7] : memref<8x128xf32, #tpu.memory_space<vmem>>, vector<8x128xf32>
    tpu.vector_store %arg5[%c0_6, %c0_7], %10 {strides = array<i32>} : memref<8x128xf32, #tpu.memory_space<vmem>>, vector<8x128xf32>,
    %c0_i32_8 = arith.constant 0 : i32
    %12 = arith.cmpi eq, %arg1, %c0_i32_8 : i32
    %13 = arith.extui %12 : i1 to i32
    %c0_i32_9 = arith.constant 0 : i32
    %14 = arith.cmpi ne, %13, %c0_i32_9 : i32
    scf.if %14 {
      %c0_10 = arith.constant 0 : index
      %c0_11 = arith.constant 0 : index
      %15 = vector.load %arg5[%c0_10, %c0_11] : memref<8x128xf32, #tpu.memory_space<vmem>>, vector<8x128xf32>
      %16 = vector.shape_cast %15 : vector<8x128xf32> to vector<1x8x128xf32>
      %cst_12 = arith.constant dense<0.000000e+00> : vector<1xf32>
      %17 = vector.multi_reduction <add>, %16, %cst_12 [1, 2] : vector<1x8x128xf32> to vector<1xf32>
      %18 = vector.shape_cast %17 : vector<1xf32> to vector<1x1x1xf32>
      %19 = vector.extract %18[0, 0, 0] : f32 from vector<1x1x1xf32>
      %c0_13 = arith.constant 0 : index
      %c0_14 = arith.constant 0 : index
      %20 = memref.load %arg4[%c0_13, %c0_14] : memref<1x1xf32, #tpu.memory_space<smem>>
      memref.store %19, %arg4[%c0_13, %c0_14] : memref<1x1xf32, #tpu.memory_space<smem>>
    } else {
    }
    return
  }
  func.func @transform_0(%arg0: i32, %arg1: i32) -> (i32, i32) {
    %c1_i32 = arith.constant 1 : i32
    %0 = arith.muli %arg0, %c1_i32 : i32
    %1 = arith.addi %0, %arg1 : i32
    %c0_i32 = arith.constant 0 : i32
    %c0_i32_0 = arith.constant 0 : i32
    return %1, %c0_i32 : i32, i32
  }
  func.func @transform_1(%arg0: i32, %arg1: i32) -> (i32, i32) {
    %c1_i32 = arith.constant 1 : i32
    %0 = arith.muli %arg0, %c1_i32 : i32
    %1 = arith.addi %0, %arg1 : i32
    %c0_i32 = arith.constant 0 : i32
    %c0_i32_0 = arith.constant 0 : i32
    return %1, %c0_i32 : i32, i32
  }
  func.func @transform_2(%arg0: i32, %arg1: i32) -> (i32, i32) {
    %c0_i32 = arith.constant 0 : i32
    %c0_i32_0 = arith.constant 0 : i32
    return %arg0, %c0_i32 : i32, i32
  }
}

</mosaic_0001>

<bundles_post_ra>
// kernel: tpu_custom_call.1
= control target key start
LH: loop header
LB: loop body
LE: loop exit
PB: predicated region body
PF: predicated region fallthrough
CT: control target
= control target key end

     0   :  { %7 = vsyncpa [#allocation4], 0  ;;  %s207_s0 = inlined_call_operand.hbm [shape: f32[16,128], index: 0, kind: input, shape index: {}]   ;;  %s208_s1 = inlined_call_operand.hbm [shape: f32[16,128], index: 1, kind: input, shape index: {}]   ;;  %s209_s2 = inlined_call_operand.hbm [shape: f32[1,1], index: 2, kind: output, shape index: {}]  }
   0x1   :  { %8 = vsyncpa [#allocation7], 0 }
   0x2   :  { %9 = vsyncpa [#allocation5], 0  ;;  %s18_s11 = sshll.u32 %s207_s0, 4  ;;  %s178_s12 = smov [#allocation3]   ;;  %s19_s11 = int_to_ptr.hbm [resolvable:$true] %s18_s11 }
   0x3   :  { %s20_s13 = sshll.u32 %s178_s12, 4  ;;  %s35_s16 = sshll.u32 %s208_s1, 4  ;;  %s21_s13 = int_to_ptr.vmem [resolvable:$true] %s20_s13  ;;  %s36_s16 = int_to_ptr.hbm [resolvable:$true] %s35_s16 }
   0x4   :  { %s179_s17 = smov 128   ;;  %s180_s18 = smov 8  }
   0x5   :  { %26 = dma.hbm_to_vmem [thread:$0]  %s19_s11, 256, %s21_s13, [#allocation4], %s179_s17, %s179_s17, %s180_s18  }
   0x6   :  { %s181_s19 = smov [#allocation6]  }
   0x7   :  { %s37_s20 = sshll.u32 %s181_s19, 4  ;;  %s38_s20 = int_to_ptr.vmem [resolvable:$true] %s37_s20 }
   0x8   :  { %43 = dma.hbm_to_vmem [thread:$0]  %s36_s16, 256, %s38_s20, [#allocation7], %s179_s17, %s179_s17, %s180_s18  }
   0x9   :  { %172 = dma.done.wait [#allocation4], 256  }
   0xa   :  { %173 = vsyncadd [#allocation4], 4294967040 }
   0xb   :  { %174 = dma.done.wait [#allocation7], 256  }
   0xc   :  { %175 = vsyncadd [#allocation7], 4294967040  ;;  %v61_v0 = vld [vmem:[#allocation3] sm:$0xff]  ;;  %v62_v1 = vld [vmem:[#allocation3 + $0x8] sm:$0xff]  ;;  %s93_s21 = sshll.u32 %s209_s2, 4  ;;  %s182_s23 = smov [#allocation8]   ;;  %s94_s21 = int_to_ptr.hbm [resolvable:$true] %s93_s21 }
   0xd   :  { %v63_v2 = vld [vmem:[#allocation6] sm:$0xff]  ;;  %v64_v3 = vld [vmem:[#allocation6 + $0x8] sm:$0xff] }
   0xe   :  { %v65_v4 = vsub.f32 %v61_v0, %v63_v2  ;;  %v66_v5 = vsub.f32 %v62_v1, %v64_v3 }
  0x10   :  { %v67_v6 = vand.u32 2147483647, %v65_v4  ;;  %v68_v7 = vand.u32 2147483647, %v66_v5 }
  0x12   :  { %v70_v8 = vadd.f32 %v68_v7, %v67_v6 }
  0x14   :  { %77 = vadd.xlane.f32.xlu0 %v70_v8 }
  0x87   :  { %v78_v9 = vpop.xlane.xlu0 %77 }
  0x88   :  { %v79_v10 = vrot.slane %v78_v9, 4 }
  0x8a   :  { %v80_v11 = vadd.f32 %v79_v10, %v78_v9 }
  0x8c   :  { %v81_v12 = vrot.slane %v80_v11, 2 }
  0x8e   :  { %v82_v13 = vadd.f32 %v81_v12, %v80_v11 }
  0x90   :  { %v83_v14 = vrot.slane %v82_v13, 1 }
  0x92   :  { %v84_v15 = vadd.f32 %v83_v14, %v82_v13 }
  0x94   :  { %105 = vpush %v84_v15 }
  0xc5   :  { %s106_s22 = spop %105 }
  0xc6   :  { %87 = sst [smem:[#allocation8]] %s106_s22 }
  0xc7   :  { %96 = dma.smem_to_hbm %s182_s23, 16, %s94_s21, [#allocation5]  }
  0xc8   :  { %176 = dma.done.wait [#allocation5], 16  }
  0xc9   :  { %177 = vsyncadd [#allocation5], 4294967280 }
  0xca   :  { %101 = sfence }
  0xcb   :  { %102 = vsyncpa [#allocation4], 1 }
  0xcc   :  { %103 = vsyncpa [#allocation7], 1 }
  0xcd   :  { %104 = vsyncpa [#allocation5], 1 }

</bundles_post_ra>
